<compile_context>
chip_gen: v5e
topology: v5e:2x2
jax: 0.10.0
libtpu: 0.0.40
codegen_flags: <defaults>
</compile_context>

<pallas_src>
import functools

import jax
import jax.numpy as jnp
from jax.experimental import pallas as pl
from jax.experimental.pallas import tpu as pltpu


def _round_up(x, m):
    return (x + m - 1) // m * m


def _pick_tile_n(n, c, itemsize):
    """Pick a batch tile: ~8 MiB per logits block, multiple of the sublane granule."""
    sub = max(8, 32 // itemsize)          # 8 for f32, 16 for bf16, 32 for int8
    target_bytes = 8 * 1024 * 1024
    t = target_bytes // max(1, c * itemsize)
    t = max(sub, min(1024, (t // sub) * sub))
    t = min(t, _round_up(n, sub))
    return int(t)


def _ce_ls_kernel(x_ref, t_ref, out_ref, acc_ref, *, num_classes, epsilon,
                  n_total, tile_n, size_average):
    i = pl.program_id(0)

    x = x_ref[...].astype(jnp.float32)            # (tile_n, C), upcast after load
    tn, c = x.shape

    # --- log-softmax pieces: all reductions along the class (lane) axis ---
    m = jnp.max(x, axis=1, keepdims=True)         # (tile_n, 1)
    z = x - m
    lse = jnp.log(jnp.sum(jnp.exp(z), axis=1))    # (tile_n,)

    # logp[target] via one-hot select (no gather on TPU); logp = z - lse
    class_ids = jax.lax.broadcasted_iota(jnp.int32, (tn, c), 1)
    z_t = jnp.sum(jnp.where(class_ids == t_ref[...], z, 0.0), axis=1)   # (tile_n,)
    sum_z = jnp.sum(z, axis=1)                                          # (tile_n,)

    # Collapsed label-smoothed loss:
    #   loss = -((1-eps) * logp[t] + (eps/C) * sum_c logp)
    # with logp[t] = z_t - lse and sum_c logp = sum_z - C * lse.
    loss = -((1.0 - epsilon) * (z_t - lse)
             + (epsilon / num_classes) * (sum_z - jnp.float32(c) * lse))  # (tile_n,)

    # Lane-dense row; mask out rows added by padding N up to a tile multiple.
    loss_row = loss.reshape(1, tn)                                        # (1, tile_n)
    col = jax.lax.broadcasted_iota(jnp.int32, (1, tn), 1)
    loss_row = jnp.where(i * tile_n + col < n_total, loss_row, 0.0)

    if size_average:
        @pl.when(i == 0)
        def _init():
            acc_ref[...] = jnp.zeros_like(acc_ref)

        acc_ref[...] += jnp.sum(loss_row, axis=1, keepdims=True)          # (1, 1)

        @pl.when(i == pl.num_programs(0) - 1)
        def _finalize():
            # divide by the *global* batch size, not the per-tile size
            out_ref[...] = acc_ref[...] * (1.0 / n_total)
    else:
        out_ref[...] = loss_row.reshape(1, 1, tn)                         # lane-dense slab


def cross_entropy_label_smooth(inputs, targets, *, num_classes, epsilon=0.1,
                               size_average=True, tile_n=None):
    """inputs: (N, C) float logits (f32 or bf16); targets: (N,) int class ids."""
    n, c = inputs.shape
    assert c == num_classes
    itemsize = jnp.dtype(inputs.dtype).itemsize
    sub = max(8, 32 // itemsize)

    if tile_n is None:
        tile_n = _pick_tile_n(n, c, itemsize)
    tile_n = max(sub, (int(tile_n) // sub) * sub)

    n_pad = _round_up(n, tile_n)
    num_tiles = n_pad // tile_n

    # No f32 upcast here: the kernel casts after load (halves HBM reads for bf16).
    x = inputs
    # Targets stay as a tiny (tile_n, 1) int32 VMEM block: the one-hot compare
    # needs them broadcast in vregs, which SMEM/scalar-prefetch cannot feed.
    t = targets.astype(jnp.int32).reshape(n, 1)
    if n_pad != n:
        x = jnp.pad(x, ((0, n_pad - n), (0, 0)))
        t = jnp.pad(t, ((0, n_pad - n), (0, 0)))

    kernel = functools.partial(
        _ce_ls_kernel,
        num_classes=num_classes,
        epsilon=float(epsilon),
        n_total=n,
        tile_n=tile_n,
        size_average=size_average,
    )

    in_specs = [
        pl.BlockSpec((tile_n, c), lambda i: (i, 0)),
        pl.BlockSpec((tile_n, 1), lambda i: (i, 0)),
    ]

    if size_average:
        out_shape = jax.ShapeDtypeStruct((1, 1), jnp.float32)
        out_spec = pl.BlockSpec((1, 1), lambda i: (0, 0))
        dims = ("arbitrary",)          # sequential accumulation across tiles
    else:
        out_shape = jax.ShapeDtypeStruct((num_tiles, 1, tile_n), jnp.float32)
        out_spec = pl.BlockSpec((1, 1, tile_n), lambda i: (i, 0, 0))
        dims = ("parallel",)           # independent tiles -> both v7x TensorCores

    # Double-buffered logits block dominates VMEM use; give it explicit headroom
    # while staying inside v7x's 64 MiB physical VMEM.
    block_bytes = tile_n * c * itemsize
    vmem_limit = int(min(64 * 1024 * 1024,
                         max(8 * 1024 * 1024, 3 * block_bytes + 2 * 1024 * 1024)))

    out = pl.pallas_call(
        kernel,
        out_shape=out_shape,
        grid=(num_tiles,),
        in_specs=in_specs,
        out_specs=out_spec,
        scratch_shapes=[pltpu.VMEM((1, 1), jnp.float32)],
        compiler_params=pltpu.CompilerParams(
            dimension_semantics=dims,
            vmem_limit_bytes=vmem_limit,
        ),
    )(x, t)

    if size_average:
        return out[0, 0]
    return out.reshape(-1)[:n]


def _reference(inputs, targets, num_classes, epsilon=0.1, size_average=True):
    log_probs = jax.nn.log_softmax(inputs.astype(jnp.float32), axis=1)
    one_hot = jax.nn.one_hot(targets, num_classes, dtype=jnp.float32)
    smoothed = (1.0 - epsilon) * one_hot + epsilon / num_classes
    neg = -smoothed * log_probs
    if size_average:
        return neg.mean(0).sum()
    return neg.sum(1)


if __name__ == "__main__":
    key = jax.random.PRNGKey(0)
    k_x, k_t = jax.random.split(key)

    num_classes = 16
    batch = 20      # deliberately not a tile multiple -> exercises row masking

    inputs = jax.random.normal(k_x, (batch, num_classes), dtype=jnp.float32)
    targets = jax.random.randint(k_t, (batch,), 0, num_classes, dtype=jnp.int32)

    # mean loss, forced small tile -> multi-tile grid exercises the accumulator
    loss = cross_entropy_label_smooth(
        inputs, targets, num_classes=num_classes, epsilon=0.1,
        size_average=True, tile_n=8)
    jax.block_until_ready(loss)
    ref = _reference(inputs, targets, num_classes, 0.1, True)
    assert jnp.allclose(loss, ref, atol=1e-5, rtol=1e-5), (loss, ref)

    # per-sample loss (lane-dense output path)
    loss_vec = cross_entropy_label_smooth(
        inputs, targets, num_classes=num_classes, epsilon=0.1,
        size_average=False, tile_n=8)
    jax.block_until_ready(loss_vec)
    ref_vec = _reference(inputs, targets, num_classes, 0.1, False)
    assert loss_vec.shape == (batch,)
    assert jnp.allclose(loss_vec, ref_vec, atol=1e-5, rtol=1e-5)

    # bf16 logits accepted natively (no wrapper-side upcast), auto tile choice
    loss_bf = cross_entropy_label_smooth(
        inputs.astype(jnp.bfloat16), targets, num_classes=num_classes,
        epsilon=0.1, size_average=True)
    jax.block_until_ready(loss_bf)
    ref_bf = _reference(inputs.astype(jnp.bfloat16).astype(jnp.float32),
                        targets, num_classes, 0.1, True)
    assert jnp.allclose(loss_bf, ref_bf, atol=1e-4, rtol=1e-4), (loss_bf, ref_bf)

    print("KERNEL_OK")
</pallas_src>

<mosaic_0001>
module attributes {stable_mosaic.version = 11 : i64} {
  func.func @_ce_ls_kernel(%arg0: i32, %arg1: memref<8x16xf32, #tpu.memory_space<vmem>>, %arg2: memref<8x1xi32, #tpu.memory_space<vmem>>, %arg3: memref<1x1xf32, #tpu.memory_space<vmem>>, %arg4: memref<1x1xf32, #tpu.memory_space<vmem>>) attributes {dimension_semantics = [#tpu.dimension_semantics<arbitrary>], iteration_bounds = array<i64: 3>, scalar_prefetch = 0 : i64, scratch_operands = 1 : i64, tpu.core_type = #tpu.core_type<tc>, window_params = [{transform_indices = @transform_0, window_bounds = array<i64: 8, 16>}, {transform_indices = @transform_1, window_bounds = array<i64: 8, 1>}, {pipeline_mode = #tpu.pipeline_mode<synchronous>, transform_indices = @transform_2, window_bounds = array<i64: 1, 1>}]} {
    %c0 = arith.constant 0 : index
    %c0_0 = arith.constant 0 : index
    %0 = vector.load %arg1[%c0, %c0_0] : memref<8x16xf32, #tpu.memory_space<vmem>>, vector<8x16xf32>
    %cst = arith.constant dense<0xFF800000> : vector<8xf32>
    %1 = vector.multi_reduction <maximumf>, %0, %cst [1] : vector<8x16xf32> to vector<8xf32>
    %2 = vector.shape_cast %1 : vector<8xf32> to vector<8x1xf32>
    %3 = vector.broadcast %2 : vector<8x1xf32> to vector<8x16xf32>
    %4 = arith.subf %0, %3 : vector<8x16xf32>
    %5 = math.exp %4 : vector<8x16xf32>
    %cst_1 = arith.constant dense<0.000000e+00> : vector<8xf32>
    %6 = vector.multi_reduction <add>, %5, %cst_1 [1] : vector<8x16xf32> to vector<8xf32>
    %7 = math.log %6 : vector<8xf32>
    %8 = tpu.iota {dimensions = array<i32: 1>} : vector<8x16xi32>
    %c0_2 = arith.constant 0 : index
    %c0_3 = arith.constant 0 : index
    %9 = vector.load %arg2[%c0_2, %c0_3] : memref<8x1xi32, #tpu.memory_space<vmem>>, vector<8x1xi32>
    %10 = vector.broadcast %9 : vector<8x1xi32> to vector<8x16xi32>
    %11 = arith.cmpi eq, %8, %10 : vector<8x16xi32>
    %cst_4 = arith.constant 0.000000e+00 : f32
    %12 = vector.broadcast %cst_4 : f32 to vector<8x16xf32>
    %13 = arith.select %11, %4, %12 : vector<8x16xi1>, vector<8x16xf32>
    %cst_5 = arith.constant dense<0.000000e+00> : vector<8xf32>
    %14 = vector.multi_reduction <add>, %13, %cst_5 [1] : vector<8x16xf32> to vector<8xf32>
    %cst_6 = arith.constant dense<0.000000e+00> : vector<8xf32>
    %15 = vector.multi_reduction <add>, %4, %cst_6 [1] : vector<8x16xf32> to vector<8xf32>
    %16 = arith.subf %14, %7 : vector<8xf32>
    %cst_7 = arith.constant 0.899999976 : f32
    %17 = vector.broadcast %cst_7 : f32 to vector<8xf32>
    %18 = arith.mulf %17, %16 : vector<8xf32>
    %cst_8 = arith.constant 1.600000e+01 : f32
    %19 = vector.broadcast %cst_8 : f32 to vector<8xf32>
    %20 = arith.mulf %19, %7 : vector<8xf32>
    %21 = arith.subf %15, %20 : vector<8xf32>
    %cst_9 = arith.constant 6.250000e-03 : f32
    %22 = vector.broadcast %cst_9 : f32 to vector<8xf32>
    %23 = arith.mulf %22, %21 : vector<8xf32>
    %24 = arith.addf %18, %23 : vector<8xf32>
    %cst_10 = arith.constant 0.000000e+00 : f32
    %25 = vector.broadcast %cst_10 : f32 to vector<8xf32>
    %26 = arith.subf %25, %24 : vector<8xf32>
    %27 = vector.shape_cast %26 : vector<8xf32> to vector<1x8xf32>
    %28 = tpu.iota {dimensions = array<i32: 1>} : vector<1x8xi32>
    %c8_i32 = arith.constant 8 : i32
    %29 = arith.muli %arg0, %c8_i32 : i32
    %30 = vector.broadcast %29 : i32 to vector<1x8xi32>
    %31 = arith.addi %30, %28 : vector<1x8xi32>
    %c20_i32 = arith.constant 20 : i32
    %32 = vector.broadcast %c20_i32 : i32 to vector<1x8xi32>
    %33 = arith.cmpi slt, %31, %32 : vector<1x8xi32>
    %cst_11 = arith.constant 0.000000e+00 : f32
    %34 = vector.broadcast %cst_11 : f32 to vector<1x8xf32>
    %35 = arith.select %33, %27, %34 : vector<1x8xi1>, vector<1x8xf32>
    %c0_i32 = arith.constant 0 : i32
    %36 = arith.cmpi eq, %arg0, %c0_i32 : i32
    %37 = arith.extui %36 : i1 to i32
    %c0_i32_12 = arith.constant 0 : i32
    %38 = arith.cmpi ne, %37, %c0_i32_12 : i32
    scf.if %38 {
      %cst_19 = arith.constant 0.000000e+00 : f32
      %47 = vector.broadcast %cst_19 : f32 to vector<1x1xf32>
      %c0_20 = arith.constant 0 : index
      %c0_21 = arith.constant 0 : index
      %48 = vector.load %arg4[%c0_20, %c0_21] : memref<1x1xf32, #tpu.memory_space<vmem>>, vector<1x1xf32>
      tpu.vector_store %arg4[%c0_20, %c0_21], %47 {strides = array<i32>} : memref<1x1xf32, #tpu.memory_space<vmem>>, vector<1x1xf32>,
    } else {
    }
    %c0_13 = arith.constant 0 : index
    %c0_14 = arith.constant 0 : index
    %39 = vector.load %arg4[%c0_13, %c0_14] : memref<1x1xf32, #tpu.memory_space<vmem>>, vector<1x1xf32>
    %cst_15 = arith.constant dense<0.000000e+00> : vector<1xf32>
    %40 = vector.multi_reduction <add>, %35, %cst_15 [1] : vector<1x8xf32> to vector<1xf32>
    %41 = vector.shape_cast %40 : vector<1xf32> to vector<1x1xf32>
    %42 = arith.addf %39, %41 : vector<1x1xf32>
    %c0_16 = arith.constant 0 : index
    %c0_17 = arith.constant 0 : index
    %43 = vector.load %arg4[%c0_16, %c0_17] : memref<1x1xf32, #tpu.memory_space<vmem>>, vector<1x1xf32>
    tpu.vector_store %arg4[%c0_16, %c0_17], %42 {strides = array<i32>} : memref<1x1xf32, #tpu.memory_space<vmem>>, vector<1x1xf32>,
    %c2_i32 = arith.constant 2 : i32
    %44 = arith.cmpi eq, %arg0, %c2_i32 : i32
    %45 = arith.extui %44 : i1 to i32
    %c0_i32_18 = arith.constant 0 : i32
    %46 = arith.cmpi ne, %45, %c0_i32_18 : i32
    scf.if %46 {
      %c0_19 = arith.constant 0 : index
      %c0_20 = arith.constant 0 : index
      %47 = vector.load %arg4[%c0_19, %c0_20] : memref<1x1xf32, #tpu.memory_space<vmem>>, vector<1x1xf32>
      %cst_21 = arith.constant 5.000000e-02 : f32
      %48 = vector.broadcast %cst_21 : f32 to vector<1x1xf32>
      %49 = arith.mulf %47, %48 : vector<1x1xf32>
      %c0_22 = arith.constant 0 : index
      %c0_23 = arith.constant 0 : index
      %50 = vector.load %arg3[%c0_22, %c0_23] : memref<1x1xf32, #tpu.memory_space<vmem>>, vector<1x1xf32>
      tpu.vector_store %arg3[%c0_22, %c0_23], %49 {strides = array<i32>} : memref<1x1xf32, #tpu.memory_space<vmem>>, vector<1x1xf32>,
    } else {
    }
    return
  }
  func.func @transform_0(%arg0: i32) -> (i32, i32) {
    %c0_i32 = arith.constant 0 : i32
    %c0_i32_0 = arith.constant 0 : i32
    return %arg0, %c0_i32 : i32, i32
  }
  func.func @transform_1(%arg0: i32) -> (i32, i32) {
    %c0_i32 = arith.constant 0 : i32
    %c0_i32_0 = arith.constant 0 : i32
    return %arg0, %c0_i32 : i32, i32
  }
  func.func @transform_2(%arg0: i32) -> (i32, i32) {
    %c0_i32 = arith.constant 0 : i32
    %c0_i32_0 = arith.constant 0 : i32
    %c0_i32_1 = arith.constant 0 : i32
    return %c0_i32, %c0_i32_0 : i32, i32
  }
}

</mosaic_0001>

<bundles_post_ra>
// kernel: tpu_custom_call.1
= control target key start
LH: loop header
LB: loop body
LE: loop exit
PB: predicated region body
PF: predicated region fallthrough
CT: control target
= control target key end

     0   :  { %7 = vsyncpa [#allocation4], 0  ;;  %s360_s9 = smov 0   ;;  %s392_s0 = inlined_call_operand.vmem [shape: f32[24,16], index: 0, kind: input, shape index: {}]   ;;  %s393_s1 = inlined_call_operand.vmem [shape: s32[24,1], index: 1, kind: input, shape index: {}]   ;;  %s394_s2 = inlined_call_operand.hbm [shape: f32[1,1], index: 2, kind: output, shape index: {}]  }
   0x1 LB: > { %s366_s10 = sadd.s32 4294967295, %s340_s9   ;;  %p270_p0 = scmp.ge.s32.totalorder %s340_s9, 1  ;;  %s340_s9 = sphi %s360_s9, %s13_s9  }
   0x2   : > { %p116_p1 = scmp.lt.s32.totalorder %s340_s9, 4 }
   0x4   : > { %p117_p2 = pnand %p270_p0, %p116_p1 }
   0x5   : > { %p136_p3 = scmp.lt.s32.totalorder (!%p117_p2), %s366_s10, 2  ;;  %s273_s19 = sshll.u32 (!%p117_p2), %s366_s10, 3 }
   0x6   : > { %120 = sbr.rel (%p117_p2) target bundleno = 421 (0x1a5), region = 28  ;;  %p274_p4 = scmp.ne.s32.totalorder (!%p117_p2), %s366_s10, 0 }
   0xb   : > { %v342_v0 = vmov 0   ;;  %s137_s11 = scalar_select %p136_p3, %s366_s10, 2  ;;  %vm145_vm0 = vcmask 130048   ;;  %v157_v10 = vlaneseq  ;;  %v179_v23 = vstv %s273_s19 }
   0xc   : > { %297 = vset.pattern.permute.xlu0 %v342_v0 }
   0xd   : > { %s271_s12 = sshll.u32 %s137_s11, 3  ;;  %v158_v11 = vand.u32 127, %v157_v10 }
   0xe   : > { %s139_s15 = scalar_lea.vmem %s392_s0, %s271_s12  ;;  %s143_s18 = scalar_lea.vmem %s393_s1, %s271_s12 }
   0xf   : > { %v144_v1 = vld [vmem:[%s139_s15] sm:$0xff]  ;;  %v180_v26 = vadd.s32 %v179_v23, %v158_v11 }
  0x10   : > { %v146_v2 = vsel %vm145_vm0, %v144_v1, -inf  ;;  %v159_v3 = vld [vmem:[%s143_s18] sm:$0xff] }
  0x11   : > { %147 = vmax.xlane.f32.xlu0 %v146_v2  ;;  %vm181_vm2 = vcmp.lt.s32.totalorder %v180_v26, 20 }
  0x25   : > { %161 = vperm.xlu0 %297, %v159_v3  }
  0x84   : > { %v148_v4 = vpop.xlane.xlu0 %147 }
  0x85   : > { %v149_v5 = vsub.f32 %v144_v1, %v148_v4 }
  0x87   : > { %v150_v6 = vmul.f32 1.442695, %v149_v5  ;;  %v168_v7 = vsel %vm145_vm0, %v149_v5, 0.0 }
  0x88   : > { %169 = vadd.xlane.f32.xlu2 %v168_v7 }
  0x89   : > { %298 = vpow2.f32 %v150_v6 }
  0x8f   : > { %v299_v8 = vpop.eup %298 }
  0x90   : > { %v152_v9 = vsel %vm145_vm0, %v299_v8, 0.0 }
  0x91   : > { %153 = vadd.xlane.f32.xlu1 %v152_v9 }
  0x97   : > { %v162_v12 = vpop.permute.xlu0 %161 }
  0x98   : > { %vm163_vm1 = vcmp.eq.s32.totalorder %v158_v11, %v162_v12 }
  0x99   : > { %v164_v13 = vsel %vm163_vm1, %v149_v5, 0.0 }
  0x9a   : > { %v165_v14 = vsel %vm145_vm0, %v164_v13, 0.0 }
  0x9b   : > { %166 = vadd.xlane.f32.xlu1 %v165_v14 }
  0xfb   : > { %v170_v20 = vpop.xlane.xlu2 %169 }
 0x104   : > { %v154_v15 = vpop.xlane.xlu1 %153 }
 0x105   : > { %300 = vlog2.f32 %v154_v15 }
 0x10b   : > { %v301_v16 = vpop.eup %300 }
 0x10c   : > { %v156_v17 = vmul.f32 0.6931472, %v301_v16 }
 0x10e   : > { %v173_v18 = vmul.f32 16.0, %v156_v17  ;;  %v167_v19 = vpop.xlane.xlu1 %166 }
 0x10f   : > { %v171_v21 = vsub.f32 %v167_v19, %v156_v17 }
 0x110   : > { %v174_v22 = vsub.f32 %v170_v20, %v173_v18 }
 0x111   : > { %v172_v24 = vmul.f32 0.9, %v171_v21 }
 0x112   : > { %v175_v25 = vmul.f32 0.00625, %v174_v22 }
 0x114   : > { %v176_v27 = vadd.f32 %v175_v25, %v172_v24 }
 0x116   : > { %v177_v28 = vsub.f32 0.0, %v176_v27  ;;  %189 = sbr.rel (%p274_p4) target bundleno = 285 (0x11d), region = 32 }
 0x118   : > { %v183_v29 = vperm.slane %v177_v28, %v158_v11 }
 0x11a   : > { %v185_v30 = vsel %vm181_vm2, %v183_v29, 0.0 }
 0x11b   : > { %vm190_vm3 = vcmask 0   ;;  %v343_v31 = vmov 0.0  }
 0x11c   : > { %191 = vst.msk [vmem:[#allocation2] sm:$0x1] %vm190_vm3, %v343_v31 }
 0x11d PF: > { %vm193_vm4 = vcmask 57344   ;;  %vm198_vm5 = vcmask 0   ;;  %p275_p5 = scmp.ne.s32.totalorder %s366_s10, 2 }
 0x11e   : > { %v194_v32 = vsel %vm193_vm4, %v185_v30, 0.0 }
 0x11f   : > { %195 = vadd.xlane.f32.xlu0 %v194_v32 }
 0x123   : > { %v192_v33 = vld [vmem:[#allocation2] sm:$0x1] }
 0x191   : > { %203 = sbr.rel (%p275_p5) target bundleno = 416 (0x1a0), region = 36 }
 0x192   : > { %v196_v34 = vpop.xlane.xlu0 %195 }
 0x193   : > { %v197_v35 = vadd.f32 %v196_v34, %v192_v33 }
 0x195   : > { %199 = vst.msk [vmem:[#allocation2] sm:$0x1] %vm198_vm5, %v197_v35 }
 0x19c   : > { %v204_v36 = vld [vmem:[#allocation2] sm:$0x1] }
 0x19d   : > { %v205_v37 = vmul.f32 0.05, %v204_v36 }
 0x19f   : > { %206 = vst.msk [vmem:[#allocation3] sm:$0x1] %vm198_vm5, %v205_v37 }
 0x1a0 PF: > { %p284_p6 = scmp.eq.s32.totalorder %s366_s10, 2  ;;  %s344_s20 = smov [#allocation3]  }
 0x1a1   : > { %s213_s21 = sshll.u32 %s344_s20, 4  ;;  %s215_s24 = sshll.u32 %s394_s2, 4  ;;  %s214_s21 = int_to_ptr.vmem [resolvable:$true] %s213_s21  ;;  %s216_s24 = int_to_ptr.hbm [resolvable:$true] %s215_s24 }
 0x1a2   : > { %281 = dma.vmem_to_hbm [thread:$0]  (%p284_p6), %s214_s21, 16, %s216_s24, [#allocation4]  }
 0x1a3   : > { %335 = dma.done.wait (%p284_p6), [#allocation4], 16  }
 0x1a4   : > { %337 = vsyncadd (%p284_p6), [#allocation4], 4294967280 }
 0x1a5 PF: > { %s13_s9 = sadd.s32 1, %s340_s9  }
 0x1a6   : > { %p10_p7 = scmp.ge.s32.totalorder %s13_s9, 5  }
 0x1a8   :  { %12 = sbr.rel (!%p10_p7) target bundleno = 1 (0x1), region = 66 }
 0x1ad   :  { %229 = vsyncpa [#allocation4], 1 }
 0x1ae   :  { %231 = vsyncpa [#allocation4 + $0x1], 1 }

</bundles_post_ra>
